<compile_context>
chip_gen: v7x
topology: tpu7x:2x2x1
jax: 0.10.0
libtpu: 0.0.40
codegen_flags: <defaults>
</compile_context>

<pallas_src>
import functools

import jax
import jax.numpy as jnp
from jax.experimental import pallas as pl
from jax.experimental.pallas import tpu as pltpu

_EPS = 1e-8


def _cosine_reconstruct_kernel(x_ref, y_ref, o_ref, *, tile_hw, hw_valid,
                               single_tile, need_mask):
    h = pl.program_id(1)

    # x_ref / y_ref block: (1, C, TILE_HW) -> (C, TILE_HW); upcast after the
    # DMA so HBM traffic stays at the input dtype width (bf16 streams at half
    # the cost of a wrapper-side upcast).
    x = x_ref[0].astype(jnp.float32)
    y = y_ref[0].astype(jnp.float32)

    dot = jnp.sum(x * y, axis=0, keepdims=True)   # (1, TILE_HW)
    nx = jnp.sum(x * x, axis=0, keepdims=True)    # (1, TILE_HW)
    ny = jnp.sum(y * y, axis=0, keepdims=True)    # (1, TILE_HW)

    # dot / max(sqrt(nx*ny), eps) == dot * rsqrt(max(nx*ny, eps^2))
    cos = dot * jax.lax.rsqrt(jnp.maximum(nx * ny, jnp.float32(_EPS * _EPS)))
    contrib = 1.0 - cos                           # (1, TILE_HW)

    if need_mask:
        # Ragged last tile: lanes past hw_valid read undefined (out-of-bounds)
        # data; select (not arithmetic) keeps NaN/Inf from propagating.
        lane = jax.lax.broadcasted_iota(jnp.int32, (1, tile_hw), 1)
        contrib = jnp.where(lane < (hw_valid - h * tile_hw), contrib, 0.0)

    if single_tile:
        o_ref[...] = contrib[None]
    else:
        @pl.when(h == 0)
        def _():
            o_ref[...] = jnp.zeros_like(o_ref)

        # Lane-wise accumulation into the per-batch output block (resident
        # across the "arbitrary" HW axis). Final reduction happens in JAX.
        o_ref[...] += contrib[None]


def _choose_tile_hw(C, HW, itemsize, max_tile_hw=None):
    """Pick a lane tile.

    Budget covers 2 inputs x 2 pipeline buffers at input width plus headroom
    for the f32 upcast / elementwise temporaries the compiler may materialize
    in VMEM. Returns (tile_hw, n_tiles)."""
    budget_bytes = 8 * 1024 * 1024
    per_lane_bytes = C * (4 * itemsize + 16)
    max_lanes = max(128, (budget_bytes // max(per_lane_bytes, 1)) // 128 * 128)
    if max_tile_hw is not None:
        max_lanes = min(max_lanes, max(128, (max_tile_hw // 128) * 128))
    if HW <= max_lanes:
        return HW, 1                       # single full-dim block, no masking
    tile = max(128, min(2048, max_lanes))  # 128-aligned lane tile
    return tile, pl.cdiv(HW, tile)


def cosine_reconstruct(x, y, *, max_tile_hw=None):
    """x, y: (B, C, H, W). Returns f32 scalar mean(1 - cosine_similarity(x, y, dim=1))."""
    assert x.shape == y.shape
    B, C, H, W = x.shape
    HW = H * W

    x2 = x.reshape(B, C, HW)
    y2 = y.reshape(B, C, HW)

    tile_hw, n_tiles = _choose_tile_hw(C, HW, jnp.dtype(x.dtype).itemsize,
                                       max_tile_hw=max_tile_hw)
    need_mask = (n_tiles > 1) and (HW % tile_hw != 0)

    kernel = functools.partial(
        _cosine_reconstruct_kernel,
        tile_hw=tile_hw,
        hw_valid=HW,
        single_tile=(n_tiles == 1),
        need_mask=need_mask,
    )

    # NOTE: for tiny problems a plain-JAX fallback would avoid kernel-launch
    # overhead; kept on the Pallas path here so the kernel is always exercised.
    partials = pl.pallas_call(
        kernel,
        out_shape=jax.ShapeDtypeStruct((B, 1, tile_hw), jnp.float32),
        grid_spec=pltpu.PrefetchScalarGridSpec(
            num_scalar_prefetch=0,
            grid=(B, n_tiles),
            in_specs=[
                pl.BlockSpec((1, C, tile_hw), lambda b, h: (b, 0, h)),
                pl.BlockSpec((1, C, tile_hw), lambda b, h: (b, 0, h)),
            ],
            out_specs=pl.BlockSpec((1, 1, tile_hw), lambda b, h: (b, 0, 0)),
        ),
        compiler_params=pltpu.CompilerParams(
            # batch axis is independent (megacore-parallel);
            # HW axis carries the per-batch lane accumulator.
            dimension_semantics=("parallel", "arbitrary"),
            vmem_limit_bytes=32 * 1024 * 1024,
        ),
    )(x2, y2)

    # Final cross-lane reduction + mean (multiply by precomputed reciprocal).
    return jnp.sum(partials) * jnp.float32(1.0 / (B * HW))


def _reference(x, y):
    # plain-JAX reference mirroring torch.nn.CosineSimilarity(dim=1, eps=1e-8)
    xf = x.astype(jnp.float32)
    yf = y.astype(jnp.float32)
    dot = jnp.sum(xf * yf, axis=1)
    nx = jnp.sqrt(jnp.sum(xf * xf, axis=1))
    ny = jnp.sqrt(jnp.sum(yf * yf, axis=1))
    cos = dot / jnp.maximum(nx * ny, _EPS)
    return jnp.mean(1.0 - cos)


if __name__ == "__main__":
    key = jax.random.PRNGKey(0)

    # Case 1: HW a multiple of 128, fits a single block.
    kx, ky = jax.random.split(key)
    B, C, H, W = 2, 4, 16, 16
    x = jax.random.normal(kx, (B, C, H, W), dtype=jnp.float32)
    y = jax.random.normal(ky, (B, C, H, W), dtype=jnp.float32)
    out = jax.block_until_ready(cosine_reconstruct(x, y))
    ref = _reference(x, y)
    assert jnp.allclose(out, ref, atol=1e-5, rtol=1e-5), (out, ref)

    # Case 2: HW not a multiple of 128 (single full-dim block path).
    kx2, ky2 = jax.random.split(ky)
    x2 = jax.random.normal(kx2, (2, 4, 10, 10), dtype=jnp.float32)
    y2 = jax.random.normal(ky2, (2, 4, 10, 10), dtype=jnp.float32)
    out2 = jax.block_until_ready(cosine_reconstruct(x2, y2))
    ref2 = _reference(x2, y2)
    assert jnp.allclose(out2, ref2, atol=1e-5, rtol=1e-5), (out2, ref2)

    # Case 3: force the tiled path with a ragged (masked) last tile.
    kx3, ky3 = jax.random.split(ky2)
    x3 = jax.random.normal(kx3, (2, 4, 16, 20), dtype=jnp.float32)  # HW=320
    y3 = jax.random.normal(ky3, (2, 4, 16, 20), dtype=jnp.float32)
    out3 = jax.block_until_ready(cosine_reconstruct(x3, y3, max_tile_hw=128))
    ref3 = _reference(x3, y3)
    assert jnp.allclose(out3, ref3, atol=1e-5, rtol=1e-5), (out3, ref3)

    print("KERNEL_OK")
</pallas_src>

<mosaic_0001>
module attributes {stable_mosaic.version = 11 : i64} {
  func.func @_cosine_reconstruct_kernel(%arg0: i32, %arg1: i32, %arg2: memref<1x4x256xf32, #tpu.memory_space<vmem>>, %arg3: memref<1x4x256xf32, #tpu.memory_space<vmem>>, %arg4: memref<1x1x256xf32, #tpu.memory_space<vmem>>) attributes {dimension_semantics = [#tpu.dimension_semantics<parallel>, #tpu.dimension_semantics<arbitrary>], iteration_bounds = array<i64: 2, 1>, scalar_prefetch = 0 : i64, scratch_operands = 0 : i64, tpu.core_type = #tpu.core_type<tc>, window_params = [{transform_indices = @transform_0, window_bounds = array<i64: 1, 4, 256>}, {transform_indices = @transform_1, window_bounds = array<i64: 1, 4, 256>}, {transform_indices = @transform_2, window_bounds = array<i64: 1, 1, 256>}]} {
    %c0 = arith.constant 0 : index
    %c0_0 = arith.constant 0 : index
    %c0_1 = arith.constant 0 : index
    %0 = vector.load %arg2[%c0, %c0_0, %c0_1] : memref<1x4x256xf32, #tpu.memory_space<vmem>>, vector<1x4x256xf32>
    %1 = vector.shape_cast %0 : vector<1x4x256xf32> to vector<4x256xf32>
    %c0_2 = arith.constant 0 : index
    %c0_3 = arith.constant 0 : index
    %c0_4 = arith.constant 0 : index
    %2 = vector.load %arg3[%c0_2, %c0_3, %c0_4] : memref<1x4x256xf32, #tpu.memory_space<vmem>>, vector<1x4x256xf32>
    %3 = vector.shape_cast %2 : vector<1x4x256xf32> to vector<4x256xf32>
    %4 = arith.mulf %1, %3 : vector<4x256xf32>
    %cst = arith.constant dense<0.000000e+00> : vector<256xf32>
    %5 = vector.multi_reduction <add>, %4, %cst [0] : vector<4x256xf32> to vector<256xf32>
    %6 = vector.shape_cast %5 : vector<256xf32> to vector<1x256xf32>
    %7 = arith.mulf %1, %1 : vector<4x256xf32>
    %cst_5 = arith.constant dense<0.000000e+00> : vector<256xf32>
    %8 = vector.multi_reduction <add>, %7, %cst_5 [0] : vector<4x256xf32> to vector<256xf32>
    %9 = vector.shape_cast %8 : vector<256xf32> to vector<1x256xf32>
    %10 = arith.mulf %3, %3 : vector<4x256xf32>
    %cst_6 = arith.constant dense<0.000000e+00> : vector<256xf32>
    %11 = vector.multi_reduction <add>, %10, %cst_6 [0] : vector<4x256xf32> to vector<256xf32>
    %12 = vector.shape_cast %11 : vector<256xf32> to vector<1x256xf32>
    %13 = arith.mulf %9, %12 : vector<1x256xf32>
    %cst_7 = arith.constant 1.000000e-16 : f32
    %14 = vector.broadcast %cst_7 : f32 to vector<1x256xf32>
    %15 = arith.maximumf %13, %14 : vector<1x256xf32>
    %16 = math.rsqrt %15 : vector<1x256xf32>
    %17 = arith.mulf %6, %16 : vector<1x256xf32>
    %cst_8 = arith.constant 1.000000e+00 : f32
    %18 = vector.broadcast %cst_8 : f32 to vector<1x256xf32>
    %19 = arith.subf %18, %17 : vector<1x256xf32>
    %20 = vector.shape_cast %19 : vector<1x256xf32> to vector<1x1x256xf32>
    %c0_9 = arith.constant 0 : index
    %c0_10 = arith.constant 0 : index
    %c0_11 = arith.constant 0 : index
    %21 = vector.load %arg4[%c0_9, %c0_10, %c0_11] : memref<1x1x256xf32, #tpu.memory_space<vmem>>, vector<1x1x256xf32>
    tpu.vector_store %arg4[%c0_9, %c0_10, %c0_11], %20 {strides = array<i32>} : memref<1x1x256xf32, #tpu.memory_space<vmem>>, vector<1x1x256xf32>,
    return
  }
  func.func @transform_0(%arg0: i32, %arg1: i32) -> (i32, i32, i32) {
    %c0_i32 = arith.constant 0 : i32
    %c0_i32_0 = arith.constant 0 : i32
    return %arg0, %c0_i32, %arg1 : i32, i32, i32
  }
  func.func @transform_1(%arg0: i32, %arg1: i32) -> (i32, i32, i32) {
    %c0_i32 = arith.constant 0 : i32
    %c0_i32_0 = arith.constant 0 : i32
    return %arg0, %c0_i32, %arg1 : i32, i32, i32
  }
  func.func @transform_2(%arg0: i32, %arg1: i32) -> (i32, i32, i32) {
    %c0_i32 = arith.constant 0 : i32
    %c0_i32_0 = arith.constant 0 : i32
    %c0_i32_1 = arith.constant 0 : i32
    return %arg0, %c0_i32, %c0_i32_0 : i32, i32, i32
  }
}

</mosaic_0001>

<bundles_post_ra>
// kernel: tpu_custom_call.1
= control target key start
LH: loop header
LB: loop body
LE: loop exit
PB: predicated region body
PF: predicated region fallthrough
CT: control target
= control target key end

     0   :  { %7 = vsyncpa [#allocation3], 0  ;;  %s917_s0 = inlined_call_operand.hbm [shape: f32[2,4,256], index: 0, kind: input, shape index: {}]   ;;  %s918_s1 = inlined_call_operand.hbm [shape: f32[2,4,256], index: 1, kind: input, shape index: {}]   ;;  %s919_s2 = inlined_call_operand.hbm [shape: f32[2,1,256], index: 2, kind: output, shape index: {}]  }
   0x1   :  { %9 = vsyncpa [#allocation3 + $0x1], 0 }
   0x2   :  { %10 = vsyncpa [#allocation6], 0 }
   0x3   :  { %12 = vsyncpa [#allocation6 + $0x1], 0 }
   0x4   :  { %13 = vsyncpa [#allocation4], 0 }
   0x5   :  { %15 = vsyncpa [#allocation4 + $0x1], 0  ;;  %s690_s9 = smov 0   ;;  %s692_s10 = smov 0  }
   0x6   :  { %s694_s11 = smov 0   ;;  %s696_s12 = smov 0  }
   0x7   :  { %s698_s13 = smov 0   ;;  %s700_s14 = smov 0  }
   0x8 LB: > { %s429_s15 = sadd.s32 4294967295, %s669_s14   ;;  %s430_s16 = sadd.s32 4294967294, %s669_s14   ;;  %s669_s14 = sphi %s700_s14, %s21_s14   ;;  %s665_s13 = sphi %s698_s13, %s939_s13   ;;  %s661_s12 = sphi %s696_s12, %s938_s12   ;;  %s657_s11 = sphi %s694_s11, %s937_s11   ;;  %s653_s10 = sphi %s692_s10, %s936_s10   ;;  %s649_s9 = sphi %s690_s9, %s935_s9  }
   0x9   : > { %s33_s17 = sadd.s32 1, %s665_s13  ;;  %s42_s18 = sadd.s32 1, %s657_s11 }
   0xa   : > { %p35_p0 = scmp.ge.s32.totalorder %s33_s17, 2  ;;  %p49_p1 = scmp.ne.s32.totalorder %s657_s11, %s653_s10 }
   0xb   : > { %p50_p2 = scmp.eq.s32.totalorder %s669_s14, 0  ;;  %p55_p3 = scmp.ne.s32.totalorder %s653_s10, %s649_s9 }
   0xc   : > { %s941_s17 = smov (%p35_p0, %s33_s17), 0  ;;  %p56_p5 = scmp.eq.s32.totalorder %s429_s15, 0 }
   0xd   : > { %p731_p4 = por %p50_p2, %p49_p1  ;;  %s37_s20 = ssub.s32 %s665_s13, %s941_s17 }
   0xe   : > { %p107_p6 = scmp.eq.s32.totalorder %s429_s15, 1  ;;  %p40_p7 = scmp.eq.s32.totalorder %s37_s20, 0 }
   0xf   : > { %p737_p8 = por %p56_p5, %p55_p3  ;;  %p113_p10 = scmp.eq.s32.totalorder %s430_s16, 1 }
  0x10   : > { %p741_p9 = por %p107_p6, %p49_p1  ;;  %p468_p13 = scmp.lt.s32.totalorder %s669_s14, 2 }
  0x11   : > { %s923_s21 = scalar_select %p737_p8, 1, 0 }
  0x12   : > { %s924_s22 = scalar_select %p741_p9, 1, 0 }
  0x13   : > { %s746_s23 = scalar_select %p40_p7, %s657_s11, %s42_s18  }
  0x14   : > { %p748_p11 = por %p113_p10, %p55_p3  ;;  %s755_s25 = sand.u32 1, %s657_s11  }
  0x15   : > { %s433_s26 = sshll.u32 %s755_s25, 3  ;;  %s448_s27 = sshll.u32 %s665_s13, 7 }
  0x16   : > { %s925_s24 = scalar_select %p748_p11, 1, 0 }
  0x17   : > { %s764_s30 = scalar_lea.hbm %s917_s0, %s448_s27  ;;  %s137_s3 = scalar_lea.vmem [#allocation2], %s433_s26 }
  0x18   : > { %s147_s4 = sshll.u32 %s137_s3, 4  ;;  %p772_p0 = pnand %p468_p13, %p731_p4  ;;  %s768_s4 = int_to_ptr.vmem [resolvable:$true] %s147_s4 }
  0x19   : > { %s134_s6 = scalar_lea.sflag [#allocation3], %s755_s25  ;;  %s523_s7 = scalar_lea.hbm %s764_s30, 128 }
  0x1a   : > { %p524_p3 = scmp.ne.s32.totalorder %s764_s30, %s523_s7  ;;  %p525_p5 = pneg %p772_p0 }
  0x1b   : > { %s528_s16 = scalar_lea.hbm %s917_s0, 256  ;;  %p529_p4 = scmp.lt.u32.totalorder %s764_s30, %s917_s0 }
  0x1c   : > { %p526_p6 = pnand %p525_p5, %p524_p3  ;;  %p530_p10 = scmp.lt.u32.totalorder %s528_s16, %s523_s7 }
  0x1d   : > { %p532_p12 = scmp.lt.u32.totalorder %s523_s7, %s764_s30 }
  0x1e   : > { %p527_p7 = pneg %p526_p6  ;;  %p531_p13 = por %p530_p10, %p529_p4 }
  0x20   : > { %p533_p1 = por %p532_p12, %p531_p13 }
  0x22   : > { %p534_p2 = pnand %p533_p1, %p527_p7 }
  0x24   : > { %537 = shalt.err (!%p534_p2)
}
  0x25   : > { %s538_s20 = scalar_lea.vmem %s768_s4, 128  ;;  %s671_s28 = smov [#allocation2]  }
  0x26   : > { %p539_p3 = scmp.ne.s32.totalorder %s768_s4, %s538_s20  ;;  %s543_s29 = sshll.u32 %s671_s28, 4  ;;  %s544_s29 = int_to_ptr.vmem [resolvable:$false] %s543_s29 }
  0x27   : > { %s545_s3 = scalar_lea.vmem %s544_s29, 256  ;;  %p546_p9 = scmp.lt.s32.totalorder %s768_s4, %s544_s29 }
  0x28   : > { %p541_p6 = pnand %p539_p3, %p525_p5  ;;  %p547_p4 = scmp.lt.s32.totalorder %s545_s3, %s538_s20 }
  0x2a   : > { %p542_p11 = pneg %p541_p6  ;;  %p548_p10 = por %p547_p4, %p546_p9 }
  0x2c   : > { %p549_p12 = pnand %p548_p10, %p542_p11 }
  0x2e   : > { %552 = shalt.err (!%p549_p12)
}
  0x2f   : > { %460 = dma.hbm_to_vmem [thread:$0]  (!%p772_p0), %s764_s30, 128, %s768_s4, %s134_s6  }
  0x30   : > { %p927_p1 = scmp.lt.s32.totalorder %s669_s14, 3  ;;  %p928_p2 = scmp.ge.s32.totalorder %s669_s14, 1 }
  0x31   : > { %s817_s16 = scalar_lea.hbm %s918_s1, %s448_s27  ;;  %s158_s18 = scalar_lea.vmem [#allocation5], %s433_s26 }
  0x32   : > { %p808_p7 = pnand %p928_p2, %p927_p1  ;;  %s168_s19 = sshll.u32 %s158_s18, 4  ;;  %s169_s19 = int_to_ptr.vmem [resolvable:$true] %s168_s19 }
  0x33   : > { %s155_s30 = scalar_lea.sflag [#allocation6], %s755_s25  ;;  %s553_s4 = scalar_lea.hbm %s817_s16, 128 }
  0x34   : > { %s929_s7 = scalar_select %p808_p7, 1, 0 }
  0x35   : > { %p554_p9 = scmp.ne.s32.totalorder %s817_s16, %s553_s4  ;;  %s558_s27 = scalar_lea.hbm %s918_s1, 256 }
  0x36   : > { %p559_p3 = scmp.lt.u32.totalorder %s817_s16, %s918_s1  ;;  %p560_p6 = scmp.lt.u32.totalorder %s558_s27, %s553_s4 }
  0x37   : > { %p556_p11 = pnand %p554_p9, %p525_p5  ;;  %p562_p10 = scmp.lt.u32.totalorder %s553_s4, %s817_s16 }
  0x38   : > { %p561_p4 = por %p560_p6, %p559_p3 }
  0x39   : > { %p557_p13 = pneg %p556_p11 }
  0x3a   : > { %p563_p12 = por %p562_p10, %p561_p4 }
  0x3c   : > { %p564_p1 = pnand %p563_p12, %p557_p13 }
  0x3e   : > { %567 = shalt.err (!%p564_p1)
}
  0x3f   : > { %s568_s25 = scalar_lea.vmem %s169_s19, 128  ;;  %s672_s26 = smov [#allocation5]  }
  0x40   : > { %p569_p2 = scmp.ne.s32.totalorder %s169_s19, %s568_s25  ;;  %s573_s3 = sshll.u32 %s672_s26, 4  ;;  %s574_s3 = int_to_ptr.vmem [resolvable:$false] %s573_s3 }
  0x41   : > { %s575_s8 = scalar_lea.vmem %s574_s3, 256  ;;  %p576_p8 = scmp.lt.s32.totalorder %s169_s19, %s574_s3 }
  0x42   : > { %p571_p9 = pnand %p569_p2, %p525_p5  ;;  %p577_p7 = scmp.lt.s32.totalorder %s575_s8, %s568_s25 }
  0x44   : > { %p572_p11 = pneg %p571_p9  ;;  %p578_p3 = por %p577_p7, %p576_p8 }
  0x46   : > { %p579_p6 = pnand %p578_p3, %p572_p11 }
  0x48   : > { %582 = shalt.err (!%p579_p6)
}
  0x49   : > { %463 = dma.hbm_to_vmem [thread:$0]  (!%p772_p0), %s817_s16, 128, %s169_s19, %s155_s30  }
  0x4a   : > { %p930_p13 = scmp.ne.s32.totalorder %s929_s7, 0 }
  0x4b   : > { %s844_s15 = sand.u32 (!%p930_p13), 1, %s653_s10   ;;  %p931_p5 = scmp.ne.s32.totalorder (!%p930_p13), %s923_s21, 0 }
  0x4c   : > { %177 = sbr.rel (%p930_p13) target bundleno = 144 (0x90), region = 28  ;;  %s440_s18 = sshll.u32 (!%p930_p13), %s844_s15, 3 }
  0x4d   : > { %s180_s4 = scalar_lea.sflag (!%p930_p13), [#allocation3], %s844_s15  ;;  %s183_s6 = scalar_lea.vmem (!%p930_p13), [#allocation2], %s440_s18 }
  0x53   : > { %636 = dma.done.wait (%p931_p5), %s180_s4, 128  }
  0x54   : > { %638 = vsyncadd (%p931_p5), %s180_s4, 4294967168  ;;  %s189_s5 = scalar_lea.sflag [#allocation6], %s844_s15  ;;  %s192_s16 = scalar_lea.vmem [#allocation5], %s440_s18 }
  0x55   : > { %640 = dma.done.wait (%p931_p5), %s189_s5, 128  }
  0x56   : > { %642 = vsyncadd (%p931_p5), %s189_s5, 4294967168  ;;  %v220_v0 = vld [vmem:[%s183_s6] sm:$0xff]  ;;  %v221_v1 = vld [vmem:[%s192_s16] sm:$0xff]  ;;  %vm226_vm0 = vcmask 1043456   ;;  %v673_v53 = vmov 1966171168   ;;  %v293_v55 = vlaneseq }
  0x57   : > { %v222_v2 = vmul.f32 %v221_v1, %v220_v0  ;;  %v241_v3 = vmul.f32 %v220_v0, %v220_v0  ;;  %v259_v4 = vmul.f32 %v221_v1, %v221_v1  ;;  %v291_v54 = vunpack.c.l.s4 %v673_v53  ;;  %s442_s21 = sshll.u32 %s844_s15, 1  ;;  %s450_s30 = sshll.u32 %s661_s12, 5 }
  0x58   : > { %v294_v60 = vshrl.u32 %v293_v55, 7  ;;  %s217_s7 = scalar_lea.vmem [#allocation7], %s442_s21  ;;  %vm307_vm1 = vcmp.lt.s32.totalorder %v293_v55, 256  ;;  %s870_s28 = scalar_lea.hbm %s919_s2, %s450_s30 }
  0x59   : > { %v243_v5 = vcombine.high %v241_v3, %v241_v3  ;;  %v245_v6 = vsel %vm226_vm0, %v241_v3, 0.0  ;;  %v261_v8 = vcombine.high %v259_v4, %v259_v4  ;;  %v263_v9 = vsel %vm226_vm0, %v259_v4, 0.0  ;;  %s325_s19 = sshll.u32 %s217_s7, 4  ;;  %s311_s29 = scalar_lea.sflag [#allocation4], %s844_s15  ;;  %s865_s19 = int_to_ptr.vmem [resolvable:$true] %s325_s19 }
  0x5a   : > { %v246_v7 = vrot.slane %v245_v6, 4  ;;  %v224_v10 = vcombine.high %v222_v2, %v222_v2  ;;  %v227_v11 = vsel %vm226_vm0, %v222_v2, 0.0  ;;  %v264_v13 = vrot.slane %v263_v9, 4  ;;  %s583_s25 = scalar_lea.vmem %s865_s19, 32  ;;  %p932_p0 = scmp.ne.s32.totalorder %s924_s22, 0 }
  0x5b   : > { %v252_v12 = vsel %vm226_vm0, %v243_v5, 0.0  ;;  %v270_v17 = vsel %vm226_vm0, %v261_v8, 0.0  ;;  %v228_v18 = vrot.slane %v227_v11, 4  ;;  %v292_v59 = vunpack.c.0.s8 %v291_v54  ;;  %p584_p8 = scmp.ne.s32.totalorder %s865_s19, %s583_s25  ;;  %s674_s12 = smov [#allocation7]  }
  0x5c   : > { %v247_v14 = vadd.f32 %v246_v7, %v245_v6  ;;  %v253_v15 = vrot.slane %v252_v12, 4  ;;  %v265_v16 = vadd.f32 %v264_v13, %v263_v9  ;;  %v234_v21 = vsel %vm226_vm0, %v224_v10, 0.0  ;;  %s587_s26 = sshll.u32 %s674_s12, 4  ;;  %s588_s26 = int_to_ptr.vmem [resolvable:$false] %s587_s26 }
  0x5d   : > { %v271_v23 = vrot.slane %v270_v17, 4  ;;  %v229_v28 = vadd.f32 %v228_v18, %v227_v11  ;;  %v235_v29 = vrot.slane %v234_v21, 4  ;;  %v295_v1 = vsub.s32 %v292_v59, %v294_v60  ;;  %p585_p7 = pnand %p584_p8, %p932_p0  ;;  %s589_s3 = scalar_lea.vmem %s588_s26, 64 }
  0x5e   : > { %v248_v19 = vrot.slane %v247_v14, 2  ;;  %v254_v20 = vadd.f32 %v253_v15, %v252_v12  ;;  %v266_v22 = vrot.slane %v265_v16, 2  ;;  %p590_p10 = scmp.lt.s32.totalorder %s865_s19, %s588_s26  ;;  %p591_p12 = scmp.lt.s32.totalorder %s589_s3, %s583_s25 }
  0x5f   : > { %v272_v27 = vadd.f32 %v271_v23, %v270_v17  ;;  %v230_v38 = vrot.slane %v229_v28, 2  ;;  %v236_v39 = vadd.f32 %v235_v29, %v234_v21  ;;  %p586_p4 = pneg %p585_p7 }
  0x60   : > { %v249_v24 = vadd.f32 %v248_v19, %v247_v14  ;;  %v255_v25 = vrot.slane %v254_v20, 2  ;;  %v267_v26 = vadd.f32 %v266_v22, %v265_v16  ;;  %p592_p1 = por %p591_p12, %p590_p10 }
  0x61   : > { %v273_v33 = vrot.slane %v272_v27, 2  ;;  %v231_v45 = vadd.f32 %v230_v38, %v229_v28  ;;  %v237_v46 = vrot.slane %v236_v39, 2 }
  0x62   : > { %v250_v30 = vrot.slane %v249_v24, 1  ;;  %v256_v31 = vadd.f32 %v255_v25, %v254_v20  ;;  %v268_v32 = vrot.slane %v267_v26, 1  ;;  %p593_p2 = pnand %p592_p1, %p586_p4 }
  0x63   : > { %v274_v37 = vadd.f32 %v273_v33, %v272_v27  ;;  %v232_v49 = vrot.slane %v231_v45, 1  ;;  %v238_v50 = vadd.f32 %v237_v46, %v236_v39 }
  0x64   : > { %v251_v34 = vadd.f32 %v250_v30, %v249_v24  ;;  %v257_v35 = vrot.slane %v256_v31, 1  ;;  %v269_v36 = vadd.f32 %v268_v32, %v267_v26 }
  0x65   : > { %v275_v41 = vrot.slane %v274_v37, 1  ;;  %v233_v51 = vadd.f32 %v232_v49, %v231_v45  ;;  %v239_v52 = vrot.slane %v238_v50, 1 }
  0x66   : > { %v258_v40 = vadd.f32 %v257_v35, %v256_v31  ;;  %v277_v42 = vmul.f32 %v269_v36, %v251_v34 }
  0x67   : > { %v276_v43 = vadd.f32 %v275_v41, %v274_v37  ;;  %v240_v57 = vadd.f32 %v239_v52, %v238_v50 }
  0x68   : > { %v279_v44 = vmax.f32 %v277_v42, 1e-16 }
  0x69   : > { %v278_v47 = vmul.f32 %v276_v43, %v258_v40 }
  0x6a   : > { %519 = vrsqrt.f32 %v279_v44 }
  0x6b   : > { %v280_v48 = vmax.f32 %v278_v47, 1e-16 }
  0x6d   : > { %521 = vrsqrt.f32 %v280_v48 }
  0x74   : > { %v520_v56 = vpop.eup %519 }
  0x75   : > { %v283_v58 = vmul.f32 %v520_v56, %v233_v51 }
  0x77   : > { %v522_v61 = vpop.eup %521  ;;  %v285_v63 = vsub.f32 1.0, %v283_v58 }
  0x78   : > { %v284_v62 = vmul.f32 %v522_v61, %v240_v57 }
  0x7a   : > { %v286_v0 = vsub.f32 1.0, %v284_v62 }
  0x7c   : > { %v289_v2 = vcombine.low %v285_v63, %v286_v0 }
  0x7e   : > { %v296_v3 = vrot.slane %v289_v2, %v295_v1 }
  0x80   : > { %v303_v4 = vrot.slane %v296_v3, %v295_v1 }
  0x82   : > { %309 = vst.msk [vmem:[%s217_s7] sm:$0x3] %vm307_vm1, %v303_v4 }
  0x83   : > { %596 = shalt.err (!%p593_p2)
}
  0x84   : > { %s597_s8 = scalar_lea.hbm %s870_s28, 32  ;;  %s601_s4 = scalar_lea.hbm %s919_s2, 64 }
  0x85   : > { %p598_p9 = scmp.ne.s32.totalorder %s870_s28, %s597_s8  ;;  %p602_p6 = scmp.lt.u32.totalorder %s870_s28, %s919_s2 }
  0x86   : > { %p603_p13 = scmp.lt.u32.totalorder %s601_s4, %s597_s8  ;;  %p605_p8 = scmp.lt.u32.totalorder %s597_s8, %s870_s28 }
  0x87   : > { %p599_p11 = pnand %p598_p9, %p932_p0 }
  0x88   : > { %p604_p5 = por %p603_p13, %p602_p6 }
  0x89   : > { %p600_p3 = pneg %p599_p11 }
  0x8a   : > { %p606_p7 = por %p605_p8, %p604_p5 }
  0x8c   : > { %p607_p4 = pnand %p606_p7, %p600_p3 }
  0x8e   : > { %610 = shalt.err (!%p607_p4)
}
  0x8f   : > { %455 = dma.vmem_to_hbm [thread:$0]  (%p932_p0), %s865_s19, 32, %s870_s28, %s311_s29  }
  0x90 PF: > { %s337_s16 = sand.u32 1, %s649_s9   ;;  %p933_p10 = scmp.ne.s32.totalorder %s925_s24, 0 }
  0x91   : > { %p934_p12 = scmp.ge.s32.totalorder %s669_s14, 2  ;;  %s338_s21 = scalar_lea.sflag [#allocation4], %s337_s16 }
  0x93   : > { %p465_p1 = pnand %p934_p12, %p933_p10 }
  0x95   : > { %644 = dma.done.wait (!%p465_p1), %s338_s21, 32  }
  0x96   : > { %646 = vsyncadd (!%p465_p1), %s338_s21, 4294967264  ;;  %s21_s14 = sadd.s32 1, %s669_s14   ;;  %s935_s9 = smov %s653_s10 }
  0x97   : > { %p18_p2 = scmp.ge.s32.totalorder %s21_s14, 4   ;;  %s936_s10 = smov %s657_s11 }
  0x98   : > { %s937_s11 = smov %s746_s23  ;;  %s938_s12 = smov %s665_s13 }
  0x99   : > { %s939_s13 = smov %s941_s17  ;;  %20 = sbr.rel (!%p18_p2) target bundleno = 8 (0x8), region = 86 }
  0xa0   :  { %343 = vsyncpa [#allocation3], 1 }
  0xa1   :  { %345 = vsyncpa [#allocation3 + $0x1], 1 }
  0xa2   :  { %346 = vsyncpa [#allocation6], 1 }
  0xa3   :  { %348 = vsyncpa [#allocation6 + $0x1], 1 }
  0xa4   :  { %349 = vsyncpa [#allocation4], 1 }
  0xa5   :  { %351 = vsyncpa [#allocation4 + $0x1], 1 }

</bundles_post_ra>
